<compile_context>
chip_gen: v6e
topology: v6e:2x2x1
jax: 0.10.0
libtpu: 0.0.40
codegen_flags: <defaults>
</compile_context>

<pallas_src>
import math
from functools import partial

import jax
import jax.numpy as jnp
from jax.experimental import pallas as pl
from jax.experimental.pallas import tpu as pltpu


def _round_up(x, m):
    return ((x + m - 1) // m) * m


def _cosine_time_embed_kernel(t_ref, out_ref, *, half, rows_packed, neg_scale, odd):
    # t_ref:   (TG, R)       f32 timesteps, R batch rows packed per output row.
    # out_ref: (TG, R * D)   D = 2*half (+1 zero col if odd).  One dense store.
    idx = jax.lax.broadcasted_iota(jnp.int32, (1, half), 1).astype(jnp.float32)
    freqs = jnp.exp(idx * neg_scale)                       # (1, half)   EUP
    t_all = t_ref[...]                                     # (TG, R)
    pieces = []
    for r in range(rows_packed):                           # unrolled at trace time
        emb = t_all[:, r:r + 1] * freqs                    # (TG, half)  VPU bcast-mul
        pieces.append(jnp.sin(emb))                        # EUP
        pieces.append(jnp.cos(emb))                        # EUP
        if odd:
            pieces.append(jnp.zeros((t_all.shape[0], 1), jnp.float32))
    row = jnp.concatenate(pieces, axis=-1)                 # packed in vregs (XLU)
    out_ref[...] = row.astype(out_ref.dtype)               # single lane-dense store


def _pick_rows_per_block(B, embed_dim, rows_packed, out_itemsize, max_rows_per_block):
    """Rows of the *original* batch handled per grid step.

    Constraints:
      * multiple of 8 * rows_packed (sublane alignment after lane packing),
      * double-buffered (in + out) VMEM tile <= ~12 MiB (fits v5e's 16 MiB /
        v6e & v7x's 32 MiB default scoped-VMEM budgets),
      * >= 2 grid blocks when B is big enough (v7x megacore sharding).
    """
    gran = 8 * rows_packed
    per_row = 2 * (embed_dim * out_itemsize + 4)           # x2 for double buffering
    vmem_budget = 12 * 1024 * 1024
    cap = min(max_rows_per_block, max(gran, vmem_budget // per_row))
    cap = max(gran, (cap // gran) * gran)
    if B <= gran:
        return gran
    half_rows = _round_up(pl.cdiv(B, 2), gran)             # ensures >= 2 blocks
    return max(gran, min(cap, half_rows))


def cosine_time_embedding(t, embed_dim, *, out_dtype=jnp.float32,
                          max_rows_per_block=1024):
    """Pallas equivalent of CosineTimeEmbedding.forward.

    t: (B,) timesteps (cast to f32 — integer timesteps > 2^24 lose precision,
       same as the torch module).  Returns (B, embed_dim) = [sin | cos] (+ zero
       column if embed_dim is odd).
    """
    assert t.ndim == 1, "t must be a 1-D batch of timesteps"
    assert embed_dim >= 4, "embed_dim must be >= 4 (half_dim - 1 would be 0)"
    B = t.shape[0]
    half = embed_dim // 2
    odd = (embed_dim % 2 == 1)
    neg_scale = -(math.log(10000.0) / (half - 1))

    # Lane packing: put R batch rows side by side on the 128-lane axis when the
    # embedding row is a small divisor of 128 (e.g. D=32 -> R=4, W=128).
    if embed_dim < 128 and 128 % embed_dim == 0:
        R = 128 // embed_dim
    else:
        R = 1
    W = R * embed_dim

    out_itemsize = jnp.dtype(out_dtype).itemsize
    rows = _pick_rows_per_block(B, embed_dim, R, out_itemsize, max_rows_per_block)

    # Pad the batch so every grid block is full (no ragged-block semantics).
    B_pad = _round_up(B, rows)
    t_f32 = t.astype(jnp.float32)
    if B_pad != B:
        t_f32 = jnp.concatenate([t_f32, jnp.zeros((B_pad - B,), jnp.float32)])

    G = B_pad // R                # packed rows
    TG = rows // R                # packed rows per block (multiple of 8)
    grid = (B_pad // rows,)

    t_in = t_f32.reshape(G, R)

    kernel = partial(_cosine_time_embed_kernel, half=half, rows_packed=R,
                     neg_scale=neg_scale, odd=odd)

    out = pl.pallas_call(
        kernel,
        out_shape=jax.ShapeDtypeStruct((G, W), out_dtype),
        grid=grid,
        in_specs=[pl.BlockSpec((TG, R), lambda i: (i, 0))],
        out_specs=pl.BlockSpec((TG, W), lambda i: (i, 0)),
        compiler_params=pltpu.CompilerParams(
            dimension_semantics=("parallel",)),
    )(t_in)

    out = out.reshape(B_pad, embed_dim)   # free row-major un-packing
    if B_pad != B:
        out = out[:B]
    return out


def _reference(t, embed_dim):
    half = embed_dim // 2
    scale = math.log(10000.0) / (half - 1)
    freqs = jnp.exp(jnp.arange(half, dtype=jnp.float32) * -scale)
    emb = t.astype(jnp.float32)[:, None] * freqs[None, :]
    emb = jnp.concatenate([jnp.sin(emb), jnp.cos(emb)], axis=-1)
    if embed_dim % 2 == 1:
        emb = jnp.pad(emb, ((0, 0), (0, 1)))
    return emb


if __name__ == "__main__":
    key = jax.random.PRNGKey(0)

    # Small shapes consistent with CosineTimeEmbedding(index_dim=1, embed_dim=32).
    B, embed_dim = 8, 32
    t = jax.random.uniform(key, (B,), dtype=jnp.float32, minval=0.0, maxval=1000.0)

    out = jax.block_until_ready(cosine_time_embedding(t, embed_dim))
    ref = _reference(t, embed_dim)
    assert out.shape == (B, embed_dim), out.shape
    # Tolerance covers sin/cos range-reduction differences (Mosaic vs XLA) at |arg|~1e3.
    assert jnp.allclose(out, ref, atol=2e-4, rtol=2e-4), "mismatch (even dim)"

    # Odd embed_dim path: zero column fused into the single dense store.
    out_odd = jax.block_until_ready(cosine_time_embedding(t, 33))
    ref_odd = _reference(t, 33)
    assert out_odd.shape == (B, 33), out_odd.shape
    assert jnp.allclose(out_odd, ref_odd, atol=2e-4, rtol=2e-4), "mismatch (odd dim)"

    # Multi-block grid; B not a multiple of the tile (exercises padding + lane packing).
    B2, D2 = 200, 64
    t2 = jax.random.uniform(jax.random.PRNGKey(0), (B2,), dtype=jnp.float32,
                            minval=0.0, maxval=1000.0)
    out2 = jax.block_until_ready(
        cosine_time_embedding(t2, D2, max_rows_per_block=64))
    ref2 = _reference(t2, D2)
    assert out2.shape == (B2, D2), out2.shape
    assert jnp.allclose(out2, ref2, atol=2e-4, rtol=2e-4), "mismatch (tiled)"

    print("KERNEL_OK")
</pallas_src>

<mosaic_0001>
module attributes {stable_mosaic.version = 11 : i64} {
  func.func @_cosine_time_embed_kernel(%arg0: i32, %arg1: memref<8x4xf32, #tpu.memory_space<vmem>>, %arg2: memref<8x128xf32, #tpu.memory_space<vmem>>) attributes {dimension_semantics = [#tpu.dimension_semantics<parallel>], iteration_bounds = array<i64: 1>, scalar_prefetch = 0 : i64, scratch_operands = 0 : i64, tpu.core_type = #tpu.core_type<tc>, window_params = [{transform_indices = @transform_0, window_bounds = array<i64: 8, 4>}, {transform_indices = @transform_1, window_bounds = array<i64: 8, 128>}]} {
    %0 = tpu.iota {dimensions = array<i32: 1>} : vector<1x16xi32>
    %1 = arith.sitofp %0 : vector<1x16xi32> to vector<1x16xf32>
    %cst = arith.constant -0.614022672 : f32
    %2 = vector.broadcast %cst : f32 to vector<1x16xf32>
    %3 = arith.mulf %1, %2 : vector<1x16xf32>
    %4 = math.exp %3 : vector<1x16xf32>
    %c0 = arith.constant 0 : index
    %c0_0 = arith.constant 0 : index
    %5 = vector.load %arg1[%c0, %c0_0] : memref<8x4xf32, #tpu.memory_space<vmem>>, vector<8x4xf32>
    %6 = vector.extract_strided_slice %5 {offsets = [0, 0], sizes = [8, 1], strides = [1, 1]} : vector<8x4xf32> to vector<8x1xf32>
    %7 = vector.broadcast %6 : vector<8x1xf32> to vector<8x16xf32>
    %8 = vector.broadcast %4 : vector<1x16xf32> to vector<8x16xf32>
    %9 = arith.mulf %7, %8 : vector<8x16xf32>
    %10 = math.sin %9 : vector<8x16xf32>
    %11 = math.cos %9 : vector<8x16xf32>
    %12 = vector.extract_strided_slice %5 {offsets = [0, 1], sizes = [8, 1], strides = [1, 1]} : vector<8x4xf32> to vector<8x1xf32>
    %13 = vector.broadcast %12 : vector<8x1xf32> to vector<8x16xf32>
    %14 = vector.broadcast %4 : vector<1x16xf32> to vector<8x16xf32>
    %15 = arith.mulf %13, %14 : vector<8x16xf32>
    %16 = math.sin %15 : vector<8x16xf32>
    %17 = math.cos %15 : vector<8x16xf32>
    %18 = vector.extract_strided_slice %5 {offsets = [0, 2], sizes = [8, 1], strides = [1, 1]} : vector<8x4xf32> to vector<8x1xf32>
    %19 = vector.broadcast %18 : vector<8x1xf32> to vector<8x16xf32>
    %20 = vector.broadcast %4 : vector<1x16xf32> to vector<8x16xf32>
    %21 = arith.mulf %19, %20 : vector<8x16xf32>
    %22 = math.sin %21 : vector<8x16xf32>
    %23 = math.cos %21 : vector<8x16xf32>
    %24 = vector.extract_strided_slice %5 {offsets = [0, 3], sizes = [8, 1], strides = [1, 1]} : vector<8x4xf32> to vector<8x1xf32>
    %25 = vector.broadcast %24 : vector<8x1xf32> to vector<8x16xf32>
    %26 = vector.broadcast %4 : vector<1x16xf32> to vector<8x16xf32>
    %27 = arith.mulf %25, %26 : vector<8x16xf32>
    %28 = math.sin %27 : vector<8x16xf32>
    %29 = math.cos %27 : vector<8x16xf32>
    %30 = tpu.concatenate %10, %11, %16, %17, %22, %23, %28, %29 in 1 : vector<8x16xf32>, vector<8x16xf32>, vector<8x16xf32>, vector<8x16xf32>, vector<8x16xf32>, vector<8x16xf32>, vector<8x16xf32>, vector<8x16xf32> -> vector<8x128xf32>
    %c0_1 = arith.constant 0 : index
    %c0_2 = arith.constant 0 : index
    %31 = vector.load %arg2[%c0_1, %c0_2] : memref<8x128xf32, #tpu.memory_space<vmem>>, vector<8x128xf32>
    tpu.vector_store %arg2[%c0_1, %c0_2], %30 {strides = array<i32>} : memref<8x128xf32, #tpu.memory_space<vmem>>, vector<8x128xf32>,
    return
  }
  func.func @transform_0(%arg0: i32) -> (i32, i32) {
    %c0_i32 = arith.constant 0 : i32
    %c0_i32_0 = arith.constant 0 : i32
    return %arg0, %c0_i32 : i32, i32
  }
  func.func @transform_1(%arg0: i32) -> (i32, i32) {
    %c0_i32 = arith.constant 0 : i32
    %c0_i32_0 = arith.constant 0 : i32
    return %arg0, %c0_i32 : i32, i32
  }
}

</mosaic_0001>

<bundles_post_ra>
// kernel: tpu_custom_call.1
= control target key start
LH: loop header
LB: loop body
LE: loop exit
PB: predicated region body
PF: predicated region fallthrough
CT: control target
= control target key end

     0   :  { %v1033_v1 = vmov 2   ;;  %v1034_v2 = vmov 0   ;;  %s1354_s0 = inlined_call_operand.vmem [shape: f32[8,4], index: 0, kind: input, shape index: {}]   ;;  %s1355_s1 = inlined_call_operand.hbm [shape: f32[8,128], index: 1, kind: output, shape index: {}]  }
   0x1   :  { %v15_v0 = vld [vmem:[%s1354_s0] sm:$0xff]  ;;  %990 = vset.pattern.permute.xlu1 %v1033_v1  ;;  %988 = vset.pattern.permute.xlu0 %v1034_v2 }
   0x2   :  { %442 = vperm.xlu1 %990, %v15_v0   ;;  %18 = vperm.xlu0 %988, %v15_v0  }
   0x3   :  { %6 = vsyncpa [#allocation3], 0  ;;  %v1035_v3 = vmov 3   ;;  %v1036_v4 = vmov 1   ;;  %v9_v5 = vlaneseq  ;;  %v1037_v47 = vmov 683565275  }
   0x4   :  { %v1038_v49 = vmov 2475754826   ;;  %v1039_v51 = vmov 2131351028   ;;  %v1040_v53 = vmov 2102212464  }
   0x5   :  { %v10_v6 = vand.u32 127, %v9_v5  ;;  %v1041_v55 = vmov 920167782   ;;  %v1042_v63 = vmov 1326507024   ;;  %s1043_s0 = smov 16  }
   0x6   :  { %991 = vset.pattern.permute.xlu1 %v1035_v3  ;;  %989 = vset.pattern.permute.xlu0 %v1036_v4  ;;  %s1044_s8 = smov 32   ;;  %s1045_s9 = smov 48  }
   0x7   :  { %654 = vperm.xlu1 %991, %v15_v0   ;;  %230 = vperm.xlu0 %989, %v15_v0   ;;  %v11_v7 = vcvt.s32.f32 %v10_v6  ;;  %s1046_s10 = smov 64   ;;  %s1047_s11 = smov 80  }
   0x8   :  { %s1048_s12 = smov 96   ;;  %s1049_s13 = smov 112  }
   0x9   :  { %v12_v8 = vmul.f32 -0.6140227, %v11_v7  ;;  %s1050_s14 = smov [#allocation2]  }
   0xa   :  { %s914_s15 = sshll.u32 %s1050_s14, 4  ;;  %s915_s15 = int_to_ptr.vmem [resolvable:$true] %s914_s15 }
   0xb   :  { %992 = vset.pattern.permute.xlu0 %v1035_v3  ;;  %v13_v9 = vmul.f32 1.442695, %v12_v8  ;;  %s1011_s16 = scalar_lea.vmem %s915_s15, 128  ;;  %p1016_p1 = scmp.lt.s32.totalorder %s915_s15, %s915_s15 }
   0xc   :  { %p1012_p0 = scmp.ne.s32.totalorder %s915_s15, %s1011_s16  ;;  %p1017_p2 = scmp.lt.s32.totalorder %s1011_s16, %s1011_s16 }
   0xd   :  { %993 = vpow2.f32 %v13_v9 }
   0xe   :  { %p1018_p3 = por %p1017_p2, %p1016_p1 }
  0x10   :  { %p1019_p4 = pnand %p1018_p3, %p1012_p0 }
  0x1a   :  { %v994_v10 = vpop.eup %993 }
  0x7d   :  { %v443_v11 = vpop.permute.xlu1 %442  ;;  %v19_v12 = vpop.permute.xlu0 %18 }
  0x7e   :  { %v1064_v13 = vmul.f32 %v994_v10, %v443_v11  ;;  %v1066_v14 = vmul.f32 %v994_v10, %v19_v12 }
  0x80   :  { %v446_v15 = vand.u32 2147483647, %v1064_v13  ;;  %v449_v16 = vand.u32 2139095040, %v1064_v13  ;;  %v22_v17 = vand.u32 2147483647, %v1066_v14  ;;  %v25_v18 = vand.u32 2139095040, %v1066_v14 }
  0x82   :  { %v450_v19 = vshrl.u32 %v449_v16, 23  ;;  %v453_v20 = vand.u32 8388607, %v446_v15  ;;  %v29_v21 = vand.u32 8388607, %v22_v17  ;;  %v655_v22 = vpop.permute.xlu1 %654  ;;  %v26_v23 = vshrl.u32 %v25_v18, 23  ;;  %v231_v26 = vpop.permute.xlu0 %230 }
  0x83   :  { %v1076_v24 = vmul.f32 %v994_v10, %v655_v22  ;;  %v1080_v35 = vmul.f32 %v994_v10, %v231_v26 }
  0x84   :  { %v938_v25 = vadd.s32 4294967169, %v450_v19  ;;  %v454_v27 = vor.u32 8388608, %v453_v20  ;;  %v922_v28 = vadd.s32 4294967169, %v26_v23  ;;  %v30_v31 = vor.u32 8388608, %v29_v21 }
  0x85   :  { %v661_v29 = vand.u32 2139095040, %v1076_v24  ;;  %v658_v33 = vand.u32 2147483647, %v1076_v24  ;;  %v237_v45 = vand.u32 2139095040, %v1080_v35 }
  0x86   :  { %v456_v30 = vadd.s32 1, %v938_v25  ;;  %v32_v32 = vadd.s32 1, %v922_v28  ;;  %v1082_v37 = vshll.u32 %v454_v27, 8  ;;  %v1084_v41 = vshll.u32 %v30_v31, 8 }
  0x87   :  { %v662_v34 = vshrl.u32 %v661_v29, 23  ;;  %v1090_v44 = vand.u32 8388607, %v658_v33 }
  0x88   :  { %vm457_vm0 = vcmp.gt.s32.totalorder %v456_v30, 0  ;;  %vm33_vm1 = vcmp.gt.s32.totalorder %v32_v32, 0 }
  0x89   :  { %v458_v36 = vsel %vm457_vm0, %v456_v30, 0  ;;  %v34_v40 = vsel %vm33_vm1, %v32_v32, 0  ;;  %v946_v43 = vadd.s32 4294967169, %v662_v34 }
  0x8a   :  { %v459_v38 = vshrl.u32 %v458_v36, 5  ;;  %v460_v39 = vand.u32 31, %v458_v36  ;;  %v1086_v42 = vand.u32 31, %v34_v40  ;;  %v1098_v57 = vshrl.u32 %v34_v40, 5 }
  0x8b   :  { %v668_v7 = vadd.s32 1, %v946_v43 }
  0x8c   :  { %v461_v46 = vsub.s32 32, %v460_v39  ;;  %v463_v48 = vshll.u32 %v1037_v47, %v460_v39  ;;  %v466_v50 = vshll.u32 %v1038_v49, %v460_v39  ;;  %v469_v52 = vshll.u32 %v1039_v51, %v460_v39 }
  0x8d   :  { %v472_v54 = vshll.u32 %v1040_v53, %v460_v39  ;;  %v475_v56 = vshll.u32 %v1041_v55, %v460_v39  ;;  %vm478_vm2 = vcmp.lt.s32.totalorder %v459_v38, 1  ;;  %vm480_vm3 = vcmp.lt.s32.totalorder %v459_v38, 3 }
  0x8e   :  { %v462_v58 = vshrl.u32 %v1037_v47, %v461_v46  ;;  %v464_v59 = vshrl.u32 %v1038_v49, %v461_v46  ;;  %v467_v60 = vshrl.u32 %v1039_v51, %v461_v46  ;;  %v470_v61 = vshrl.u32 %v1040_v53, %v461_v46 }
  0x8f   :  { %v473_v62 = vshrl.u32 %v1041_v55, %v461_v46  ;;  %v476_v0 = vshrl.u32 %v1042_v63, %v461_v46  ;;  %vm481_vm4 = vcmp.lt.s32.totalorder %v459_v38, 4  ;;  %v37_v4 = vsub.s32 32, %v1086_v42 }
  0x90   :  { %v465_v1 = vor.u32 %v464_v59, %v463_v48  ;;  %v468_v2 = vor.u32 %v467_v60, %v466_v50  ;;  %v471_v3 = vor.u32 %v470_v61, %v469_v52  ;;  %vm479_vm5 = vcmp.lt.s32.totalorder %v459_v38, 2 }
  0x91   :  { %v474_v5 = vor.u32 %v473_v62, %v472_v54  ;;  %v477_v6 = vor.u32 %v476_v0, %v475_v56  ;;  %v39_v19 = vshll.u32 %v1037_v47, %v1086_v42  ;;  %v40_v22 = vshrl.u32 %v1038_v49, %v37_v4 }
  0x92   :  { %v482_v8 = vsel %vm478_vm2, %v462_v58, %v465_v1  ;;  %v483_v9 = vsel %vm481_vm4, %v471_v3, 2102212464  ;;  %v486_v10 = vsel %vm478_vm2, %v465_v1, %v468_v2  ;;  %v490_v11 = vsel %vm478_vm2, %v468_v2, %v471_v3 }
  0x93   :  { %v484_v12 = vsel %vm480_vm3, %v468_v2, %v483_v9  ;;  %v487_v16 = vsel %vm481_vm4, %v474_v5, 920167782  ;;  %v491_v18 = vsel %vm481_vm4, %v477_v6, 1326507024  ;;  %v42_v23 = vshll.u32 %v1038_v49, %v1086_v42 }
  0x94   :  { %v488_v20 = vsel %vm480_vm3, %v471_v3, %v487_v16  ;;  %v492_v21 = vsel %vm480_vm3, %v474_v5, %v491_v18  ;;  %v485_v25 = vsel %vm479_vm5, %v482_v8, %v484_v12  ;;  %v43_v28 = vshrl.u32 %v1039_v51, %v37_v4 }
  0x95   :  { %v489_v26 = vsel %vm479_vm5, %v486_v10, %v488_v20  ;;  %v493_v27 = vsel %vm479_vm5, %v490_v11, %v492_v21  ;;  %v41_v34 = vor.u32 %v40_v22, %v39_v19  ;;  %v45_v39 = vshll.u32 %v1039_v51, %v1086_v42 }
  0x96   :  { %v1123_v29 = vmul.u32.u64.low %v1082_v37, %v493_v27  ;;  %v1124_v30 = vmul.u32.u64.high %v1082_v37, %v493_v27, %v1123_v29  ;;  %v1127_v31 = vmul.u32.u64.low %v1082_v37, %v489_v26  ;;  %v1128_v32 = vmul.u32.u64.high %v1082_v37, %v489_v26, %v1127_v31 }
  0x97   :  { %v44_v36 = vor.u32 %v43_v28, %v42_v23  ;;  %v46_v40 = vshrl.u32 %v1040_v53, %v37_v4  ;;  %v38_v38 = vshrl.u32 %v1037_v47, %v37_v4  ;;  %v48_v43 = vshll.u32 %v1040_v53, %v1086_v42 }
  0x98   :  { %v49_v46 = vshrl.u32 %v1041_v55, %v37_v4  ;;  %v52_v48 = vshrl.u32 %v1042_v63, %v37_v4  ;;  %v501_v50 = vmul.u32 %v1082_v37, %v485_v25  ;;  %v51_v54 = vshll.u32 %v1041_v55, %v1086_v42 }
  0x99   :  { %v47_v52 = vor.u32 %v46_v40, %v45_v39  ;;  %vm54_vm6 = vcmp.lt.s32.totalorder %v1098_v57, 1  ;;  %vm503_vm7 = vc.u32 %v1124_v30, %v1127_v31  ;;  %v504_v56 = vadd.s32 1, %v1128_v32 }
  0x9a   :  { %v50_v58 = vor.u32 %v49_v46, %v48_v43  ;;  %vm55_vm8 = vcmp.lt.s32.totalorder %v1098_v57, 2  ;;  %v53_v59 = vor.u32 %v52_v48, %v51_v54  ;;  %vm56_vm9 = vcmp.lt.s32.totalorder %v1098_v57, 3 }
  0x9b   :  { %vm57_vm10 = vcmp.lt.s32.totalorder %v1098_v57, 4  ;;  %v62_v37 = vsel %vm54_vm6, %v41_v34, %v44_v36  ;;  %v505_v60 = vsel %vm503_vm7, %v504_v56, %v1128_v32  ;;  %v66_v62 = vsel %vm54_vm6, %v44_v36, %v47_v52 }
  0x9c   :  { %v59_v61 = vsel %vm57_vm10, %v47_v52, 2102212464  ;;  %v63_v42 = vsel %vm57_vm10, %v50_v58, 920167782  ;;  %v506_v0 = vadd.s32 %v505_v60, %v501_v50  ;;  %v58_v1 = vsel %vm54_vm6, %v38_v38, %v41_v34 }
  0x9d   :  { %v64_v2 = vsel %vm56_vm9, %v47_v52, %v63_v42  ;;  %v67_v3 = vsel %vm57_vm10, %v53_v59, 1326507024  ;;  %v60_v4 = vsel %vm56_vm9, %v44_v36, %v59_v61  ;;  %vm669_vm11 = vcmp.gt.s32.totalorder %v668_v7, 0 }
  0x9e   :  { %v65_v5 = vsel %vm55_vm8, %v62_v37, %v64_v2  ;;  %v68_v6 = vsel %vm56_vm9, %v50_v58, %v67_v3  ;;  %v507_v8 = vadd.s32 536870912, %v506_v0  ;;  %v670_v18 = vsel %vm669_vm11, %v668_v7, 0 }
  0x9f   :  { %v69_v9 = vsel %vm55_vm8, %v66_v62, %v68_v6  ;;  %v1155_v10 = vmul.u32.u64.low %v1084_v41, %v65_v5  ;;  %v1156_v11 = vmul.u32.u64.high %v1084_v41, %v65_v5, %v1155_v10  ;;  %v61_v20 = vsel %vm55_vm8, %v58_v1, %v60_v4 }
  0xa0   :  { %v1160_v12 = vmul.u32.u64.low %v1084_v41, %v69_v9  ;;  %v1161_v16 = vmul.u32.u64.high %v1084_v41, %v69_v9, %v1160_v12  ;;  %v1163_v19 = vshrl.u32 %v507_v8, 30  ;;  %v672_v21 = vand.u32 31, %v670_v18 }
  0xa1   :  { %v666_v22 = vor.u32 8388608, %v1090_v44  ;;  %v234_v23 = vand.u32 2147483647, %v1080_v35  ;;  %v238_v25 = vshrl.u32 %v237_v45, 23  ;;  %v80_v27 = vadd.s32 1, %v1156_v11 }
  0xa2   :  { %v509_v26 = vshll.u32 %v1163_v19, 30  ;;  %v673_v28 = vsub.s32 32, %v672_v21  ;;  %v675_v7 = vshll.u32 %v1037_v47, %v672_v21  ;;  %v77_v29 = vmul.u32 %v1084_v41, %v61_v20 }
  0xa3   :  { %vm79_vm12 = vc.u32 %v1161_v16, %v1155_v10  ;;  %v678_v57 = vshll.u32 %v1038_v49, %v672_v21  ;;  %v681_v44 = vshll.u32 %v1039_v51, %v672_v21  ;;  %v671_v34 = vshrl.u32 %v670_v18, 5 }
  0xa4   :  { %v1179_v32 = vsub.s32 %v506_v0, %v509_v26  ;;  %v81_v45 = vsel %vm79_vm12, %v80_v27, %v1156_v11  ;;  %v676_v36 = vshrl.u32 %v1038_v49, %v673_v28  ;;  %v679_v40 = vshrl.u32 %v1039_v51, %v673_v28 }
  0xa5   :  { %v82_v39 = vadd.s32 %v81_v45, %v77_v29  ;;  %v682_v38 = vshrl.u32 %v1040_v53, %v673_v28  ;;  %v684_v41 = vshll.u32 %v1040_v53, %v672_v21  ;;  %v685_v48 = vshrl.u32 %v1041_v55, %v673_v28 }
  0xa6   :  { %v512_v43 = vsub.s32 0, %v1179_v32  ;;  %v677_v46 = vor.u32 %v676_v36, %v675_v7  ;;  %v687_v50 = vshll.u32 %v1041_v55, %v672_v21  ;;  %v680_v54 = vor.u32 %v679_v40, %v678_v57 }
  0xa7   :  { %v83_v52 = vadd.s32 536870912, %v82_v39  ;;  %v683_v56 = vor.u32 %v682_v38, %v681_v44  ;;  %v688_v58 = vshrl.u32 %v1042_v63, %v673_v28  ;;  %v674_v37 = vshrl.u32 %v1037_v47, %v673_v28 }
  0xa8   :  { %v939_v59 = vmin.u32 %v512_v43, %v1179_v32  ;;  %v686_v60 = vor.u32 %v685_v48, %v684_v41  ;;  %vm690_vm13 = vcmp.lt.s32.totalorder %v671_v34, 1  ;;  %vm692_vm14 = vcmp.lt.s32.totalorder %v671_v34, 3 }
  0xa9   :  { %v1192_v61 = vshrl.u32 %v83_v52, 30  ;;  %v689_v42 = vor.u32 %v688_v58, %v687_v50  ;;  %vm693_vm15 = vcmp.lt.s32.totalorder %v671_v34, 4  ;;  %vm691_vm0 = vcmp.lt.s32.totalorder %v671_v34, 2 }
  0xaa   :  { %v514_v62 = vclz %v939_v59  ;;  %v695_v0 = vsel %vm693_vm15, %v683_v56, 2102212464  ;;  %v698_v1 = vsel %vm690_vm13, %v677_v46, %v680_v54  ;;  %v699_v3 = vsel %vm693_vm15, %v686_v60, 920167782 }
  0xab   :  { %v85_v2 = vshll.u32 %v1192_v61, 30  ;;  %v702_v4 = vsel %vm690_vm13, %v680_v54, %v683_v56  ;;  %v706_v5 = vshll.u32 %v666_v22, 8  ;;  %v694_v6 = vsel %vm690_vm13, %v674_v37, %v677_v46 }
  0xac   :  { %v700_v8 = vsel %vm692_vm14, %v683_v56, %v699_v3  ;;  %v703_v9 = vsel %vm693_vm15, %v689_v42, 1326507024  ;;  %v930_v11 = vadd.s32 4294967169, %v238_v25  ;;  %v696_v18 = vsel %vm692_vm14, %v680_v54, %v695_v0 }
  0xad   :  { %v86_v12 = vsub.s32 %v82_v39, %v85_v2  ;;  %v701_v20 = vsel %vm691_vm0, %v698_v1, %v700_v8  ;;  %v704_v21 = vsel %vm692_vm14, %v686_v60, %v703_v9  ;;  %v940_v26 = vadd.s32 4294967294, %v514_v62 }
  0xae   :  { %v705_v27 = vsel %vm691_vm0, %v702_v4, %v704_v21  ;;  %v1200_v28 = vmul.u32.u64.low %v706_v5, %v701_v20  ;;  %v1201_v7 = vmul.u32.u64.high %v706_v5, %v701_v20, %v1200_v28  ;;  %v697_v25 = vsel %vm691_vm0, %v694_v6, %v696_v18 }
  0xaf   :  { %v88_v22 = vsub.s32 0, %v86_v12  ;;  %v1204_v29 = vmul.u32.u64.low %v706_v5, %v705_v27  ;;  %v1205_v57 = vmul.u32.u64.high %v706_v5, %v705_v27, %v1204_v29  ;;  %v244_v44 = vadd.s32 1, %v930_v11 }
  0xb0   :  { %vm941_vm1 = vcmp.lt.s32.totalorder %v940_v26, 0  ;;  %v716_v36 = vadd.s32 1, %v1201_v7  ;;  %v241_v39 = vand.u32 8388607, %v234_v23  ;;  %v713_v38 = vmul.u32 %v706_v5, %v697_v25 }
  0xb1   :  { %v923_v45 = vmin.u32 %v88_v22, %v86_v12  ;;  %vm245_vm2 = vcmp.gt.s32.totalorder %v244_v44, 0  ;;  %vm715_vm3 = vc.u32 %v1205_v57, %v1200_v28  ;;  %v1214_v46 = vsel %vm941_vm1, 0, %v940_v26 }
  0xb2   :  { %v246_v41 = vsel %vm245_vm2, %v244_v44, 0  ;;  %v717_v43 = vsel %vm715_vm3, %v716_v36, %v1201_v7  ;;  %v242_v54 = vor.u32 8388608, %v241_v39  ;;  %v522_v58 = vsub.s32 4294967266, %v1214_v46 }
  0xb3   :  { %v90_v40 = vclz %v923_v45  ;;  %v718_v48 = vadd.s32 %v717_v43, %v713_v38  ;;  %v248_v50 = vand.u32 31, %v246_v41  ;;  %v78_v59 = vadd.s32 %v1155_v10, %v1161_v16 }
  0xb4   :  { %v247_v60 = vshrl.u32 %v246_v41, 5  ;;  %v282_v20 = vshll.u32 %v242_v54, 8  ;;  %vm24_vm5 = vcmp.lt.s32.totalorder %v1066_v14, 0  ;;  %vm1256_vm11 = vcmp.le.f32.partialorder %v22_v17, 0.7853982 }
  0xb5   :  { %v924_v34 = vadd.s32 4294967294, %v90_v40  ;;  %v719_v52 = vadd.s32 536870912, %v718_v48  ;;  %v249_v56 = vsub.s32 32, %v248_v50  ;;  %v251_v1 = vshll.u32 %v1037_v47, %v248_v50 }
  0xb6   :  { %v254_v4 = vshll.u32 %v1038_v49, %v248_v50  ;;  %v257_v18 = vshll.u32 %v1039_v51, %v248_v50  ;;  %v260_v27 = vshll.u32 %v1040_v53, %v248_v50  ;;  %v263_v22 = vshll.u32 %v1041_v55, %v248_v50 }
  0xb7   :  { %vm925_vm4 = vcmp.lt.s32.totalorder %v924_v34, 0  ;;  %v1219_v0 = vshrl.u32 %v719_v52, 30  ;;  %v252_v3 = vshrl.u32 %v1038_v49, %v249_v56  ;;  %v255_v5 = vshrl.u32 %v1039_v51, %v249_v56 }
  0xb8   :  { %v93_v37 = vsel %vm925_vm4, 0, %v924_v34  ;;  %v258_v10 = vshrl.u32 %v1040_v53, %v249_v56  ;;  %v261_v7 = vshrl.u32 %v1041_v55, %v249_v56  ;;  %v264_v29 = vshrl.u32 %v1042_v63, %v249_v56 }
  0xb9   :  { %v94_v42 = vsub.s32 32, %v93_v37  ;;  %v98_v62 = vsub.s32 4294967266, %v93_v37  ;;  %v95_v2 = vshll.u32 %v86_v12, %v93_v37  ;;  %v721_v9 = vshll.u32 %v1219_v0, 30 }
  0xba   :  { %v253_v16 = vor.u32 %v252_v3, %v251_v1  ;;  %v256_v11 = vor.u32 %v255_v5, %v254_v4  ;;  %v259_v49 = vor.u32 %v258_v10, %v257_v18  ;;  %v250_v51 = vshrl.u32 %v1037_v47, %v249_v56 }
  0xbb   :  { %v96_v6 = vshrl.u32 %v78_v59, %v94_v42  ;;  %v99_v8 = vadd.s32 127, %v98_v62  ;;  %v1228_v12 = vsub.s32 %v718_v48, %v721_v9  ;;  %vm266_vm6 = vcmp.lt.s32.totalorder %v247_v60, 1 }
  0xbc   :  { %v262_v36 = vor.u32 %v261_v7, %v260_v27  ;;  %v265_v39 = vor.u32 %v264_v29, %v263_v22  ;;  %vm268_vm7 = vcmp.lt.s32.totalorder %v247_v60, 3  ;;  %vm269_vm8 = vcmp.lt.s32.totalorder %v247_v60, 4 }
  0xbd   :  { %v97_v21 = vor.u32 %v96_v6, %v95_v2  ;;  %v100_v26 = vshll.u32 %v99_v8, 23  ;;  %v724_v44 = vsub.s32 0, %v1228_v12  ;;  %v274_v38 = vsel %vm266_vm6, %v253_v16, %v256_v11 }
  0xbe   :  { %v271_v41 = vsel %vm269_vm8, %v259_v49, 2102212464  ;;  %v275_v55 = vsel %vm269_vm8, %v262_v36, 920167782  ;;  %v278_v63 = vsel %vm266_vm6, %v256_v11, %v259_v49  ;;  %v279_v43 = vsel %vm269_vm8, %v265_v39, 1326507024 }
  0xbf   :  { %v101_v25 = vor.u32 4788187, %v100_v26  ;;  %v104_v45 = vcvt.s32.f32 %v97_v21  ;;  %v947_v40 = vmin.u32 %v724_v44, %v1228_v12  ;;  %vm267_vm9 = vcmp.lt.s32.totalorder %v247_v60, 2 }
  0xc0   :  { %v276_v47 = vsel %vm268_vm7, %v259_v49, %v275_v55  ;;  %v270_v50 = vsel %vm266_vm6, %v250_v51, %v253_v16  ;;  %v280_v54 = vsel %vm268_vm7, %v262_v36, %v279_v43  ;;  %v108_v56 = vsub.s32 4, %v1192_v61 }
  0xc1   :  { %v102_v53 = vand.u32 2147483647, %v101_v25  ;;  %v726_v48 = vclz %v947_v40  ;;  %v277_v52 = vsel %vm267_vm9, %v274_v38, %v276_v47  ;;  %v272_v42 = vsel %vm268_vm7, %v256_v11, %v271_v41 }
  0xc2   :  { %v281_v62 = vsel %vm267_vm9, %v278_v63, %v280_v54  ;;  %v1248_v3 = vmul.u32.u64.low %v282_v20, %v277_v52  ;;  %v1249_v4 = vmul.u32.u64.high %v282_v20, %v277_v52, %v1248_v3  ;;  %v273_v60 = vsel %vm267_vm9, %v270_v50, %v272_v42 }
  0xc3   :  { %v105_v34 = vmul.f32 %v104_v45, %v102_v53  ;;  %v948_v37 = vadd.s32 4294967294, %v726_v48  ;;  %v1245_v1 = vmul.u32.u64.low %v282_v20, %v281_v62  ;;  %v1246_v2 = vmul.u32.u64.high %v282_v20, %v281_v62, %v1245_v1 }
  0xc4   :  { %v518_v9 = vsub.s32 32, %v1214_v46  ;;  %v523_v10 = vadd.s32 127, %v522_v58  ;;  %v109_v16 = vsel %vm24_vm5, %v108_v56, %v1192_v61  ;;  %v292_v17 = vadd.s32 1, %v1249_v4 }
  0xc5   :  { %v106_v59 = vxor.u32 2147483648, %v105_v34  ;;  %vm949_vm10 = vcmp.lt.s32.totalorder %v948_v37, 0  ;;  %vm291_vm12 = vc.u32 %v1246_v2, %v1248_v3  ;;  %v289_v18 = vmul.u32 %v282_v20, %v273_v60 }
  0xc6   :  { %v729_v11 = vsel %vm949_vm10, 0, %v948_v37  ;;  %v502_v21 = vadd.s32 %v1127_v31, %v1124_v30  ;;  %v293_v26 = vsel %vm291_vm12, %v292_v17, %v1249_v4  ;;  %v111_v58 = vsel %vm1256_vm11, 0, %v109_v16 }
  0xc7   :  { %v107_v5 = vsel %vm24_vm5, %v106_v59, %v105_v34  ;;  %v734_v27 = vsub.s32 4294967266, %v729_v11  ;;  %v294_v49 = vadd.s32 %v293_v26, %v289_v18  ;;  %v524_v7 = vshll.u32 %v523_v10, 23 }
  0xc8   :  { %v110_v8 = vsel %vm1256_vm11, %v1066_v14, %v107_v5  ;;  %v520_v61 = vshrl.u32 %v502_v21, %v518_v9  ;;  %v115_v29 = vadd.s32 3, %v111_v58  ;;  %v519_v25 = vshll.u32 %v1179_v32, %v1214_v46 }
  0xc9   :  { %995 = vcosq.f32 %v110_v8  ;;  %v295_v22 = vadd.s32 536870912, %v294_v49  ;;  %v735_v44 = vadd.s32 127, %v734_v27  ;;  %v525_v45 = vor.u32 4788187, %v524_v7 }
  0xca   :  { %997 = vsinq.f32 %v110_v8  ;;  %v521_v20 = vor.u32 %v520_v61, %v519_v25  ;;  %v730_v30 = vsub.s32 32, %v729_v11  ;;  %v116_v36 = vand.u32 3, %v115_v29 }
  0xcb   :  { %v1279_v51 = vshrl.u32 %v295_v22, 30  ;;  %v219_v39 = vand.u32 3, %v111_v58  ;;  %v714_v53 = vadd.s32 %v1200_v28, %v1205_v57  ;;  %v736_v40 = vshll.u32 %v735_v44, 23 }
  0xcc   :  { %v526_v55 = vand.u32 2147483647, %v525_v45  ;;  %v528_v63 = vcvt.s32.f32 %v521_v20  ;;  %v731_v32 = vshll.u32 %v1228_v12, %v729_v11  ;;  %vm114_vm13 = vweird.f32 %v1066_v14 }
  0xcd   :  { %v297_v31 = vshll.u32 %v1279_v51, 30  ;;  %v732_v43 = vshrl.u32 %v714_v53, %v730_v30  ;;  %vm118_vm14 = vcmp.eq.s32.totalorder %v116_v36, 0  ;;  %vm121_vm15 = vcmp.eq.s32.totalorder %v116_v36, 2 }
  0xce   :  { %vm221_vm0 = vcmp.eq.s32.totalorder %v219_v39, 0  ;;  %vm224_vm1 = vcmp.eq.s32.totalorder %v219_v39, 2  ;;  %v737_v50 = vor.u32 4788187, %v736_v40  ;;  %vm117_vm2 = vcmp.lt.s32.totalorder %v116_v36, 2 }
  0xcf   :  { %v298_v38 = vsub.s32 %v294_v49, %v297_v31  ;;  %vm220_vm3 = vcmp.lt.s32.totalorder %v219_v39, 2  ;;  %v733_v12 = vor.u32 %v732_v43, %v731_v32  ;;  %v529_v62 = vmul.f32 %v528_v63, %v526_v55 }
  0xd0   :  { %v738_v5 = vand.u32 2147483647, %v737_v50  ;;  %v290_v16 = vadd.s32 %v1248_v3, %v1246_v2  ;;  %vm448_vm5 = vcmp.lt.s32.totalorder %v1064_v13, 0  ;;  %vm1299_vm6 = vcmp.le.f32.partialorder %v446_v15, 0.7853982 }
  0xd1   :  { %v300_v34 = vsub.s32 0, %v298_v38  ;;  %v740_v60 = vcvt.s32.f32 %v733_v12  ;;  %v530_v8 = vxor.u32 2147483648, %v529_v62  ;;  %vm660_vm7 = vcmp.lt.s32.totalorder %v1076_v24, 0 }
  0xd2   :  { %v532_v44 = vsub.s32 4, %v1163_v19  ;;  %vm1312_vm8 = vcmp.le.f32.partialorder %v658_v33, 0.7853982  ;;  %v320_v30 = vsub.s32 4, %v1279_v51  ;;  %vm236_vm9 = vcmp.lt.s32.totalorder %v1080_v35, 0 }
  0xd3   :  { %v931_v28 = vmin.u32 %v300_v34, %v298_v38  ;;  %v741_v10 = vmul.f32 %v740_v60, %v738_v5  ;;  %v531_v14 = vsel %vm448_vm5, %v530_v8, %v529_v62  ;;  %vm235_vm10 = vcmp.le.f32.partialorder %v234_v23, 0.7853982 }
  0xd4   :  { %v534_v2 = vsel %vm1299_vm6, %v1064_v13, %v531_v14  ;;  %v533_v33 = vsel %vm448_vm5, %v532_v44, %v1163_v19  ;;  %v744_v39 = vsub.s32 4, %v1219_v0  ;;  %v321_v53 = vsel %vm236_vm9, %v320_v30, %v1279_v51 }
  0xd5   :  { %v302_v59 = vclz %v931_v28  ;;  %v742_v58 = vxor.u32 2147483648, %v741_v10  ;;  %999 = vcosq.f32 %v534_v2  ;;  %v535_v40 = vsel %vm1299_vm6, 0, %v533_v33 }
  0xd6   :  { %v996_v41 = vpop.eup %995  ;;  %1001 = vsinq.f32 %v534_v2  ;;  %v745_v23 = vsel %vm660_vm7, %v744_v39, %v1219_v0  ;;  %v643_v43 = vand.u32 3, %v535_v40  ;;  %vm326_vm11 = vweird.f32 %v1080_v35 }
  0xd7   :  { %v998_v46 = vpop.eup %997  ;;  %v122_v48 = vxor.u32 2147483648, %v996_v41  ;;  %v932_v6 = vadd.s32 4294967294, %v302_v59  ;;  %v743_v3 = vsel %vm660_vm7, %v742_v58, %v741_v10  ;;  %v747_v55 = vsel %vm1312_vm8, 0, %v745_v23 }
  0xd8   :  { %v119_v47 = vxor.u32 2147483648, %v998_v46  ;;  %v746_v20 = vsel %vm1312_vm8, %v1076_v24, %v743_v3  ;;  %v751_v34 = vadd.s32 3, %v747_v55  ;;  %vm644_vm7 = vcmp.lt.s32.totalorder %v643_v43, 2 }
  0xd9   :  { %v226_v57 = vsel %vm224_vm1, %v122_v48, %v998_v46  ;;  %v123_v52 = vsel %vm121_vm15, %v122_v48, %v998_v46  ;;  %vm933_vm4 = vcmp.lt.s32.totalorder %v932_v6, 0  ;;  %1003 = vcosq.f32 %v746_v20 }
  0xda   :  { %v223_v54 = vsel %vm221_vm0, %v996_v41, %v119_v47  ;;  %v120_v56 = vsel %vm118_vm14, %v996_v41, %v119_v47  ;;  %v305_v9 = vsel %vm933_vm4, 0, %v932_v6  ;;  %1005 = vsinq.f32 %v746_v20 }
  0xdb   :  { %v227_v37 = vsel %vm220_vm3, %v223_v54, %v226_v57  ;;  %v124_v42 = vsel %vm117_vm2, %v120_v56, %v123_v52  ;;  %v306_v11 = vsub.s32 32, %v305_v9  ;;  %v310_v17 = vsub.s32 4294967266, %v305_v9 }
  0xdc   :  { %v228_v1 = vsel %vm114_vm13, nan, %v227_v37  ;;  %v1290_v4 = vsel %vm114_vm13, nan, %v124_v42  ;;  %v307_v18 = vshll.u32 %v298_v38, %v305_v9  ;;  %v323_v38 = vsel %vm235_vm10, 0, %v321_v53 }
  0xdd   :  { %866 = vrot.lane.b32.xlu1 %v228_v1, %s1043_s0  ;;  %v308_v21 = vshrl.u32 %v290_v16, %v306_v11  ;;  %v311_v26 = vadd.s32 127, %v310_v17  ;;  %v539_v41 = vadd.s32 3, %v535_v40  ;;  %v327_v19 = vadd.s32 3, %v323_v38 }
  0xde   :  { %v431_v51 = vand.u32 3, %v323_v38  ;;  %vm645_vm14 = vcmp.eq.s32.totalorder %v643_v43, 0  ;;  %vm648_vm15 = vcmp.eq.s32.totalorder %v643_v43, 2  ;;  %v752_v52 = vand.u32 3, %v751_v34 }
  0xdf   :  { %v309_v27 = vor.u32 %v308_v21, %v307_v18  ;;  %v312_v49 = vshll.u32 %v311_v26, 23  ;;  %v540_v46 = vand.u32 3, %v539_v41  ;;  %v328_v48 = vand.u32 3, %v327_v19 }
  0xe0   :  { %vm432_vm0 = vcmp.lt.s32.totalorder %v431_v51, 2  ;;  %vm433_vm1 = vcmp.eq.s32.totalorder %v431_v51, 0  ;;  %v855_v54 = vand.u32 3, %v747_v55  ;;  %vm436_vm5 = vcmp.eq.s32.totalorder %v431_v51, 2 }
  0xe1   :  { %v313_v61 = vor.u32 4788187, %v312_v49  ;;  %v316_v29 = vcvt.s32.f32 %v309_v27  ;;  %vm542_vm12 = vcmp.eq.s32.totalorder %v540_v46, 0  ;;  %vm545_vm13 = vcmp.eq.s32.totalorder %v540_v46, 2 }
  0xe2   :  { %v1000_v63 = vpop.eup %999  ;;  %vm329_vm2 = vcmp.lt.s32.totalorder %v328_v48, 2  ;;  %vm330_vm3 = vcmp.eq.s32.totalorder %v328_v48, 0  ;;  %vm333_vm4 = vcmp.eq.s32.totalorder %v328_v48, 2  ;;  %vm541_vm6 = vcmp.lt.s32.totalorder %v540_v46, 2 }
  0xe3   :  { %v314_v22 = vand.u32 2147483647, %v313_v61  ;;  %v1002_v32 = vpop.eup %1001  ;;  %v546_v28 = vxor.u32 2147483648, %v1000_v63  ;;  %vm857_vm8 = vcmp.eq.s32.totalorder %v855_v54, 0 }
  0xe4   :  { %v543_v50 = vxor.u32 2147483648, %v1002_v32 }
  0xe5   :  { %v317_v25 = vmul.f32 %v316_v29, %v314_v22  ;;  %v547_v42 = vsel %vm545_vm13, %v546_v28, %v1002_v32  ;;  %v650_v6 = vsel %vm648_vm15, %v546_v28, %v1002_v32  ;;  %vm538_vm13 = vweird.f32 %v1064_v13 }
  0xe6   :  { %v1004_v47 = vpop.eup %1003  ;;  %v544_v37 = vsel %vm542_vm12, %v1000_v63, %v543_v50  ;;  %v647_v5 = vsel %vm645_vm14, %v1000_v63, %v543_v50  ;;  %vm757_vm12 = vcmp.eq.s32.totalorder %v752_v52, 2  ;;  %vm753_vm14 = vcmp.lt.s32.totalorder %v752_v52, 2 }
  0xe7   :  { %v318_v45 = vxor.u32 2147483648, %v317_v25  ;;  %v1006_v57 = vpop.eup %1005  ;;  %v758_v10 = vxor.u32 2147483648, %v1004_v47  ;;  %v548_v21 = vsel %vm541_vm6, %v544_v37, %v547_v42  ;;  %v651_v26 = vsel %vm644_vm7, %v647_v5, %v650_v6 }
  0xe8   :  { %v755_v9 = vxor.u32 2147483648, %v1006_v57  ;;  %v549_v61 = vsel %vm538_vm13, nan, %v548_v21  ;;  %v652_v7 = vsel %vm538_vm13, nan, %v651_v26  ;;  %vm750_vm15 = vweird.f32 %v1076_v24 }
  0xe9   :  { %v319_v31 = vsel %vm236_vm9, %v318_v45, %v317_v25  ;;  %vm860_vm9 = vcmp.eq.s32.totalorder %v855_v54, 2  ;;  %v759_v58 = vsel %vm757_vm12, %v758_v10, %v1006_v57  ;;  %vm905_vm6 = vcmask 916480  }
  0xea   :  { %v322_v36 = vsel %vm235_vm10, %v1080_v35, %v319_v31  ;;  %vm754_vm10 = vcmp.eq.s32.totalorder %v752_v52, 0  ;;  %v859_v27 = vsel %vm857_vm8, %v1004_v47, %v755_v9  ;;  %v862_v49 = vsel %vm860_vm9, %v758_v10, %v1006_v57 }
  0xeb   :  { %1007 = vcosq.f32 %v322_v36  ;;  %v756_v14 = vsel %vm754_vm10, %v1004_v47, %v755_v9 }
  0xec   :  { %1009 = vsinq.f32 %v322_v36  ;;  %v760_v35 = vsel %vm753_vm14, %v756_v14, %v759_v58 }
  0xed   :  { %v761_v3 = vsel %vm750_vm15, nan, %v760_v35 }
  0xf8   :  { %v1008_v0 = vpop.eup %1007 }
  0xf9   :  { %v1010_v56 = vpop.eup %1009  ;;  %v334_v12 = vxor.u32 2147483648, %v1008_v0 }
  0xfa   :  { %v331_v59 = vxor.u32 2147483648, %v1010_v56 }
  0xfb   :  { %v335_v62 = vsel %vm333_vm4, %v334_v12, %v1010_v56  ;;  %v438_v1 = vsel %vm436_vm5, %v334_v12, %v1010_v56  ;;  %vm901_vm4 = vcmask 654336   ;;  %vm903_vm5 = vcmask 785408  }
  0xfc   :  { %v332_v60 = vsel %vm330_vm3, %v1008_v0, %v331_v59  ;;  %v435_v8 = vsel %vm433_vm1, %v1008_v0, %v331_v59  ;;  %vm895_vm1 = vcmask 261120   ;;  %vm899_vm3 = vcmask 523264  }
  0xfd   :  { %v336_v16 = vsel %vm329_vm2, %v332_v60, %v335_v62  ;;  %v439_v11 = vsel %vm432_vm0, %v435_v8, %v438_v1  ;;  %vm893_vm0 = vcmask 130048   ;;  %vm897_vm2 = vcmask 392192  }
  0xfe   :  { %v337_v17 = vsel %vm326_vm11, nan, %v336_v16  ;;  %v440_v18 = vsel %vm326_vm11, nan, %v439_v11  ;;  %vm856_vm11 = vcmp.lt.s32.totalorder %v855_v54, 2 }
  0xff   :  { %870 = vrot.lane.b32.xlu0 %v337_v17, %s1044_s8  ;;  %874 = vrot.lane.b32.xlu1 %v440_v18, %s1045_s9  ;;  %v863_v2 = vsel %vm856_vm11, %v859_v27, %v862_v49 }
 0x100   :  { %v864_v22 = vsel %vm750_vm15, nan, %v863_v2 }
 0x103   :  { %878 = vrot.lane.b32.xlu0 %v549_v61, %s1046_s10  ;;  %882 = vrot.lane.b32.xlu1 %v652_v7, %s1047_s11 }
 0x107   :  { %886 = vrot.lane.b32.xlu0 %v761_v3, %s1048_s12  ;;  %890 = vrot.lane.b32.xlu1 %v864_v22, %s1049_s13 }
 0x14f   :  { %v867_v29 = vpop.permute.xlu1 %866 }
 0x150   :  { %v894_v13 = vsel %vm893_vm0, %v1290_v4, %v867_v29 }
 0x171   :  { %v871_v25 = vpop.permute.xlu0 %870  ;;  %v875_v44 = vpop.permute.xlu1 %874 }
 0x172   :  { %v896_v15 = vsel %vm895_vm1, %v894_v13, %v871_v25 }
 0x173   :  { %v898_v20 = vsel %vm897_vm2, %v896_v15, %v875_v44 }
 0x175   :  { %v879_v45 = vpop.permute.xlu0 %878  ;;  %v883_v30 = vpop.permute.xlu1 %882 }
 0x176   :  { %v900_v24 = vsel %vm899_vm3, %v898_v20, %v879_v45 }
 0x177   :  { %v902_v31 = vsel %vm901_vm4, %v900_v24, %v883_v30 }
 0x179   :  { %v887_v33 = vpop.permute.xlu0 %886  ;;  %v891_v36 = vpop.permute.xlu1 %890 }
 0x17a   :  { %v904_v39 = vsel %vm903_vm5, %v902_v31, %v887_v33 }
 0x17b   :  { %v906_v4 = vsel %vm905_vm6, %v904_v39, %v891_v36 }
 0x17c   :  { %907 = vst [vmem:[#allocation2] sm:$0xff] %v906_v4 }
 0x17d   :  { %1022 = shalt.err (!%p1019_p4)
}
 0x17e   :  { %917 = dma.vmem_to_hbm [thread:$0]  %s915_s15, 128, %s1355_s1, [#allocation3]  }
 0x17f   :  { %1031 = dma.done.wait [#allocation3], 128  }
 0x180   :  { %1032 = vsyncadd [#allocation3], 4294967168 }
 0x181   :  { %921 = vsyncpa [#allocation3], 1 }

</bundles_post_ra>
